<compile_context>
chip_gen: v6e
topology: v6e:2x2x1
jax: 0.10.0
libtpu: 0.0.40
codegen_flags: <defaults>
</compile_context>

<pallas_src>
import functools

import jax
import jax.numpy as jnp
from jax import lax
from jax.experimental import pallas as pl
from jax.experimental.pallas import tpu as pltpu


def _cm_loss_kernel(img_ref, feat_ref, tgt_ref, lse_ref, tlogit_ref,
                    x_sc, m_sc, l_sc, t_sc, *, inv_temp):
    # img_ref   : (tb, D)    image rows for this batch tile (storage dtype)
    # feat_ref  : (tn, D)    native-layout slice of the memory bank
    # tgt_ref   : (tb, 1)    int32 target cluster index per row
    # lse_ref   : (1, tb, 1) f32 per-core partial logsumexp    (written last k)
    # tlogit_ref: (1, tb, 1) f32 per-core partial target logit (written last k)
    # x_sc      : (tb, D)    normalized, temp-scaled image (bank dtype)
    # m/l/t_sc  : (tb, 1)    running max / sum-exp / target logit (f32)
    c = pl.program_id(0)
    k = pl.program_id(2)
    nk = pl.num_programs(2)

    @pl.when(k == 0)
    def _init():
        x = img_ref[...].astype(jnp.float32)                      # (tb, D)
        # F.normalize(x, dim=1) with eps=1e-12, done in f32; fold 1/temp in.
        ssq = jnp.sum(x * x, axis=-1, keepdims=True)
        inv_norm = pl.reciprocal(jnp.maximum(jnp.sqrt(ssq), 1e-12),
                                 approx=False)
        x_sc[...] = (x * (inv_norm * inv_temp)).astype(x_sc.dtype)
        m_sc[...] = jnp.full_like(m_sc, -jnp.inf)
        l_sc[...] = jnp.zeros_like(l_sc)
        t_sc[...] = jnp.zeros_like(t_sc)

    # Logits tile on the MXU: (tb, D) . (tn, D)^T -> (tb, tn), f32 accumulate.
    logits = lax.dot_general(
        x_sc[...], feat_ref[...],
        dimension_numbers=(((1,), (1,)), ((), ())),
        preferred_element_type=jnp.float32)
    tn = logits.shape[1]

    # Online-softmax carry (rescale running sum-exp by exp(m_old - m_new)).
    m_prev = m_sc[...]
    m_new = jnp.maximum(m_prev, jnp.max(logits, axis=-1, keepdims=True))
    alpha = jnp.exp(m_prev - m_new)
    l_sc[...] = alpha * l_sc[...] + jnp.sum(jnp.exp(logits - m_new),
                                            axis=-1, keepdims=True)
    m_sc[...] = m_new

    # Target logit: each target lands in exactly one (core, k) tile.  Keep the
    # (tb, tn) iota loop-invariant and fold the tile offset into the per-row
    # (tb, 1) target instead (scalar-side subtract, saves a (tb,tn) VPU pass).
    col = lax.broadcasted_iota(jnp.int32, logits.shape, 1)
    rel_tgt = tgt_ref[...] - (c * nk + k) * tn                   # (tb, 1)
    hit = col == rel_tgt
    # TODO(synk): no bounds check -- a target >= num_samples silently yields
    # loss = logsumexp (PyTorch F.cross_entropy would raise instead).
    t_sc[...] += jnp.sum(jnp.where(hit, logits, 0.0), axis=-1, keepdims=True)

    @pl.when(k == nk - 1)
    def _finalize():
        lse_ref[0, :, :] = m_sc[...] + jnp.log(l_sc[...])
        tlogit_ref[0, :, :] = t_sc[...]


def _choose_tile(dim, candidates):
    for c in candidates:
        if dim % c == 0:
            return c
    return dim  # fall back to a full-extent (untiled) block


def cluster_memory_forward(image_inputs, text_inputs, targets, features,
                           temp=0.02, momentum=0.2, use_hard=False,
                           tb=None, tn=None, num_cores=2):
    """Pallas implementation of ClusterMemory.forward -> scalar loss.

    text_inputs / momentum / use_hard only influence the backward (memory
    update) in the PyTorch module; they do not affect the forward output.
    """
    del momentum, use_hard
    # TODO(synk): CM / CM_Hard .backward's in-place momentum update of
    # `features` (driven by text_inputs / use_hard) is a training-time side
    # effect with no forward-pass Pallas equivalent; text_inputs is unused.
    del text_inputs

    B, D = image_inputs.shape
    N, Df = features.shape
    assert D == Df, (image_inputs.shape, features.shape)

    if tb is None:
        # Prefer a single batch tile so the bank is streamed exactly once.
        tb = B if B <= 512 else _choose_tile(B, (512, 256, 128, 64, 32, 16, 8))
    if tn is None:
        tn = _choose_tile(N, (2048, 1024, 512, 256, 128))
    assert B % tb == 0 and N % tn == 0

    nb, nk = B // tb, N // tn
    # Split the bank axis (not the batch axis) across TensorCores: each core
    # reads a disjoint slice of the bank so total bank HBM reads stay 1x.
    nc = num_cores if (num_cores > 1 and nk % num_cores == 0) else 1
    nk_pc = nk // nc

    tgt2d = targets.astype(jnp.int32).reshape(B, 1)
    kernel = functools.partial(_cm_loss_kernel, inv_temp=1.0 / float(temp))

    cost = pl.CostEstimate(
        flops=2 * B * N * D,
        transcendentals=B * N,
        bytes_accessed=(nb * N * D * features.dtype.itemsize
                        + B * D * image_inputs.dtype.itemsize
                        + B * 4 + 2 * nc * B * 4),
    )

    lse_parts, tlogit_parts = pl.pallas_call(
        kernel,
        out_shape=(jax.ShapeDtypeStruct((nc, B, 1), jnp.float32),
                   jax.ShapeDtypeStruct((nc, B, 1), jnp.float32)),
        grid_spec=pltpu.PrefetchScalarGridSpec(
            num_scalar_prefetch=0,
            grid=(nc, nb, nk_pc),
            in_specs=[
                pl.BlockSpec((tb, D), lambda c, i, k: (i, 0)),              # image rows
                pl.BlockSpec((tn, D), lambda c, i, k: (c * nk_pc + k, 0)),  # bank, native (N, D)
                pl.BlockSpec((tb, 1), lambda c, i, k: (i, 0)),              # targets
            ],
            out_specs=[
                pl.BlockSpec((1, tb, 1), lambda c, i, k: (c, i, 0)),        # partial lse
                pl.BlockSpec((1, tb, 1), lambda c, i, k: (c, i, 0)),        # partial target logit
            ],
            scratch_shapes=[
                pltpu.VMEM((tb, D), features.dtype),  # normalized/scaled image
                pltpu.VMEM((tb, 1), jnp.float32),     # running max
                pltpu.VMEM((tb, 1), jnp.float32),     # running sum-exp
                pltpu.VMEM((tb, 1), jnp.float32),     # target logit
            ],
        ),
        compiler_params=pltpu.CompilerParams(
            # Core split on the bank axis; batch and bank tiles are serial.
            dimension_semantics=("parallel", "arbitrary", "arbitrary"),
            vmem_limit_bytes=48 * 1024 * 1024,   # <= v7x's 64 MiB VMEM/TC
        ),
        cost_estimate=cost,
    )(image_inputs, features, tgt2d)

    # Tiny O(B) cross-core merge + batch mean in plain JAX.
    lse = jax.scipy.special.logsumexp(lse_parts, axis=0)       # (B, 1)
    tgt_logit = jnp.sum(tlogit_parts, axis=0)                  # (B, 1)
    return jnp.mean(lse - tgt_logit)


def _reference_forward(image_inputs, targets, features, temp):
    # Pure-JAX reference mirroring the kernel's mixed precision: f32
    # normalization, 1/temp folded into x, bank-dtype matmul operands,
    # f32 accumulation and softmax/CE.
    x = image_inputs.astype(jnp.float32)
    inv = 1.0 / jnp.maximum(
        jnp.sqrt(jnp.sum(x * x, axis=1, keepdims=True)), 1e-12)
    x = (x * (inv * (1.0 / temp))).astype(features.dtype).astype(jnp.float32)
    logits = x @ features.astype(jnp.float32).T
    lse = jax.scipy.special.logsumexp(logits, axis=-1)
    tgt_logit = jnp.take_along_axis(
        logits, targets.astype(jnp.int32)[:, None], axis=1)[:, 0]
    return jnp.mean(lse - tgt_logit)


if __name__ == "__main__":
    # Small shapes: batch B, feature dim D, memory bank size N (num_samples).
    B, D, N = 16, 128, 512
    temp = 0.02

    key = jax.random.PRNGKey(0)
    k_img, k_txt, k_tgt, k_feat = jax.random.split(key, 4)

    image_inputs = jax.random.normal(k_img, (B, D), dtype=jnp.float32)
    image_inputs = image_inputs.astype(jnp.bfloat16)
    text_inputs = jax.random.normal(k_txt, (B, D), dtype=jnp.float32)
    text_inputs = text_inputs.astype(jnp.bfloat16)
    targets = jax.random.randint(k_tgt, (B,), 0, N, dtype=jnp.int32)

    # The module registers `features` as zeros(N, D); use a deterministic,
    # row-normalized bf16 bank so the matmul / CE path is actually exercised.
    features = jax.random.normal(k_feat, (N, D), dtype=jnp.float32)
    features = features / jnp.linalg.norm(features, axis=1, keepdims=True)
    features = features.astype(jnp.bfloat16)

    ref = _reference_forward(image_inputs, targets, features, temp)

    # Small tiles: exercises the core split on the bank axis (nc=2), the
    # online-LSE carry across bank tiles, and cross-tile target masking.
    loss_small = cluster_memory_forward(
        image_inputs, text_inputs, targets, features, temp=temp,
        momentum=0.2, use_hard=False, tb=16, tn=128, num_cores=2)
    loss_small = jax.block_until_ready(loss_small)
    assert jnp.allclose(loss_small, ref, rtol=2e-3, atol=2e-3), (loss_small, ref)

    # Default tiling: single batch tile, largest bank tile that divides N.
    loss_default = cluster_memory_forward(
        image_inputs, text_inputs, targets, features, temp=temp)
    loss_default = jax.block_until_ready(loss_default)
    assert jnp.allclose(loss_default, ref, rtol=2e-3, atol=2e-3), (
        loss_default, ref)

    print("KERNEL_OK")
</pallas_src>

<mosaic_0001>
module attributes {stable_mosaic.version = 11 : i64} {
  func.func @_cm_loss_kernel(%arg0: i32, %arg1: i32, %arg2: i32, %arg3: memref<16x128xbf16, #tpu.memory_space<vmem>>, %arg4: memref<128x128xbf16, #tpu.memory_space<vmem>>, %arg5: memref<16x1xi32, #tpu.memory_space<vmem>>, %arg6: memref<1x16x1xf32, #tpu.memory_space<vmem>>, %arg7: memref<1x16x1xf32, #tpu.memory_space<vmem>>, %arg8: memref<16x128xbf16, #tpu.memory_space<vmem>>, %arg9: memref<16x1xf32, #tpu.memory_space<vmem>>, %arg10: memref<16x1xf32, #tpu.memory_space<vmem>>, %arg11: memref<16x1xf32, #tpu.memory_space<vmem>>) attributes {dimension_semantics = [#tpu.dimension_semantics<parallel>, #tpu.dimension_semantics<arbitrary>, #tpu.dimension_semantics<arbitrary>], iteration_bounds = array<i64: 2, 1, 2>, scalar_prefetch = 0 : i64, scratch_operands = 4 : i64, tpu.core_type = #tpu.core_type<tc>, window_params = [{transform_indices = @transform_0, window_bounds = array<i64: 16, 128>}, {transform_indices = @transform_1, window_bounds = array<i64: 128, 128>}, {transform_indices = @transform_2, window_bounds = array<i64: 16, 1>}, {transform_indices = @transform_3, window_bounds = array<i64: 1, 16, 1>}, {transform_indices = @transform_4, window_bounds = array<i64: 1, 16, 1>}]} {
    %c0_i32 = arith.constant 0 : i32
    %0 = arith.cmpi eq, %arg2, %c0_i32 : i32
    %1 = arith.extui %0 : i1 to i32
    %c0_i32_0 = arith.constant 0 : i32
    %2 = arith.cmpi ne, %1, %c0_i32_0 : i32
    scf.if %2 {
      %c0_23 = arith.constant 0 : index
      %c0_24 = arith.constant 0 : index
      %41 = vector.load %arg3[%c0_23, %c0_24] : memref<16x128xbf16, #tpu.memory_space<vmem>>, vector<16x128xbf16>
      %42 = arith.extf %41 : vector<16x128xbf16> to vector<16x128xf32>
      %43 = arith.mulf %42, %42 : vector<16x128xf32>
      %cst_25 = arith.constant dense<0.000000e+00> : vector<16xf32>
      %44 = vector.multi_reduction <add>, %43, %cst_25 [1] : vector<16x128xf32> to vector<16xf32>
      %45 = vector.shape_cast %44 : vector<16xf32> to vector<16x1xf32>
      %46 = math.sqrt %45 : vector<16x1xf32>
      %cst_26 = arith.constant 9.99999996E-13 : f32
      %47 = vector.broadcast %cst_26 : f32 to vector<16x1xf32>
      %48 = arith.maximumf %46, %47 : vector<16x1xf32>
      %49 = tpu.reciprocal %48 : vector<16x1xf32> -> vector<16x1xf32>
      %cst_27 = arith.constant 5.000000e+01 : f32
      %50 = vector.broadcast %cst_27 : f32 to vector<16x1xf32>
      %51 = arith.mulf %49, %50 : vector<16x1xf32>
      %52 = vector.broadcast %51 : vector<16x1xf32> to vector<16x128xf32>
      %53 = arith.mulf %42, %52 : vector<16x128xf32>
      %54 = arith.truncf %53 : vector<16x128xf32> to vector<16x128xbf16>
      %c0_28 = arith.constant 0 : index
      %c0_29 = arith.constant 0 : index
      %55 = vector.load %arg8[%c0_28, %c0_29] : memref<16x128xbf16, #tpu.memory_space<vmem>>, vector<16x128xbf16>
      tpu.vector_store %arg8[%c0_28, %c0_29], %54 {strides = array<i32>} : memref<16x128xbf16, #tpu.memory_space<vmem>>, vector<16x128xbf16>,
      %cst_30 = arith.constant 0xFF800000 : f32
      %56 = vector.broadcast %cst_30 : f32 to vector<16x1xf32>
      %c0_31 = arith.constant 0 : index
      %c0_32 = arith.constant 0 : index
      %57 = vector.load %arg9[%c0_31, %c0_32] : memref<16x1xf32, #tpu.memory_space<vmem>>, vector<16x1xf32>
      tpu.vector_store %arg9[%c0_31, %c0_32], %56 {strides = array<i32>} : memref<16x1xf32, #tpu.memory_space<vmem>>, vector<16x1xf32>,
      %cst_33 = arith.constant 0.000000e+00 : f32
      %58 = vector.broadcast %cst_33 : f32 to vector<16x1xf32>
      %c0_34 = arith.constant 0 : index
      %c0_35 = arith.constant 0 : index
      %59 = vector.load %arg10[%c0_34, %c0_35] : memref<16x1xf32, #tpu.memory_space<vmem>>, vector<16x1xf32>
      tpu.vector_store %arg10[%c0_34, %c0_35], %58 {strides = array<i32>} : memref<16x1xf32, #tpu.memory_space<vmem>>, vector<16x1xf32>,
      %cst_36 = arith.constant 0.000000e+00 : f32
      %60 = vector.broadcast %cst_36 : f32 to vector<16x1xf32>
      %c0_37 = arith.constant 0 : index
      %c0_38 = arith.constant 0 : index
      %61 = vector.load %arg11[%c0_37, %c0_38] : memref<16x1xf32, #tpu.memory_space<vmem>>, vector<16x1xf32>
      tpu.vector_store %arg11[%c0_37, %c0_38], %60 {strides = array<i32>} : memref<16x1xf32, #tpu.memory_space<vmem>>, vector<16x1xf32>,
    } else {
    }
    %c0 = arith.constant 0 : index
    %c0_1 = arith.constant 0 : index
    %3 = vector.load %arg8[%c0, %c0_1] : memref<16x128xbf16, #tpu.memory_space<vmem>>, vector<16x128xbf16>
    %c0_2 = arith.constant 0 : index
    %c0_3 = arith.constant 0 : index
    %4 = vector.load %arg4[%c0_2, %c0_3] : memref<128x128xbf16, #tpu.memory_space<vmem>>, vector<128x128xbf16>
    %cst = arith.constant dense<0.000000e+00> : vector<16x128xf32>
    %5 = tpu.matmul %3, %4, %cst {dimension_numbers = #tpu.dot_dimension_numbers<[1], [1], [0], [0], [0, 0, 1, 0], [], []>} : vector<16x128xbf16>, vector<128x128xbf16>, vector<16x128xf32> -> vector<16x128xf32>
    %c0_4 = arith.constant 0 : index
    %c0_5 = arith.constant 0 : index
    %6 = vector.load %arg9[%c0_4, %c0_5] : memref<16x1xf32, #tpu.memory_space<vmem>>, vector<16x1xf32>
    %cst_6 = arith.constant dense<0xFF800000> : vector<16xf32>
    %7 = vector.multi_reduction <maximumf>, %5, %cst_6 [1] : vector<16x128xf32> to vector<16xf32>
    %8 = vector.shape_cast %7 : vector<16xf32> to vector<16x1xf32>
    %9 = arith.maximumf %6, %8 : vector<16x1xf32>
    %10 = arith.subf %6, %9 : vector<16x1xf32>
    %11 = math.exp %10 : vector<16x1xf32>
    %c0_7 = arith.constant 0 : index
    %c0_8 = arith.constant 0 : index
    %12 = vector.load %arg10[%c0_7, %c0_8] : memref<16x1xf32, #tpu.memory_space<vmem>>, vector<16x1xf32>
    %13 = arith.mulf %11, %12 : vector<16x1xf32>
    %14 = vector.broadcast %9 : vector<16x1xf32> to vector<16x128xf32>
    %15 = arith.subf %5, %14 : vector<16x128xf32>
    %16 = math.exp %15 : vector<16x128xf32>
    %cst_9 = arith.constant dense<0.000000e+00> : vector<16xf32>
    %17 = vector.multi_reduction <add>, %16, %cst_9 [1] : vector<16x128xf32> to vector<16xf32>
    %18 = vector.shape_cast %17 : vector<16xf32> to vector<16x1xf32>
    %19 = arith.addf %13, %18 : vector<16x1xf32>
    %c0_10 = arith.constant 0 : index
    %c0_11 = arith.constant 0 : index
    %20 = vector.load %arg10[%c0_10, %c0_11] : memref<16x1xf32, #tpu.memory_space<vmem>>, vector<16x1xf32>
    tpu.vector_store %arg10[%c0_10, %c0_11], %19 {strides = array<i32>} : memref<16x1xf32, #tpu.memory_space<vmem>>, vector<16x1xf32>,
    %c0_12 = arith.constant 0 : index
    %c0_13 = arith.constant 0 : index
    %21 = vector.load %arg9[%c0_12, %c0_13] : memref<16x1xf32, #tpu.memory_space<vmem>>, vector<16x1xf32>
    tpu.vector_store %arg9[%c0_12, %c0_13], %9 {strides = array<i32>} : memref<16x1xf32, #tpu.memory_space<vmem>>, vector<16x1xf32>,
    %22 = tpu.iota {dimensions = array<i32: 1>} : vector<16x128xi32>
    %c0_14 = arith.constant 0 : index
    %c0_15 = arith.constant 0 : index
    %23 = vector.load %arg5[%c0_14, %c0_15] : memref<16x1xi32, #tpu.memory_space<vmem>>, vector<16x1xi32>
    %c2_i32 = arith.constant 2 : i32
    %24 = arith.muli %arg0, %c2_i32 : i32
    %25 = arith.addi %24, %arg2 : i32
    %c128_i32 = arith.constant 128 : i32
    %26 = arith.muli %25, %c128_i32 : i32
    %27 = vector.broadcast %26 : i32 to vector<16x1xi32>
    %28 = arith.subi %23, %27 : vector<16x1xi32>
    %29 = vector.broadcast %28 : vector<16x1xi32> to vector<16x128xi32>
    %30 = arith.cmpi eq, %22, %29 : vector<16x128xi32>
    %c0_16 = arith.constant 0 : index
    %c0_17 = arith.constant 0 : index
    %31 = vector.load %arg11[%c0_16, %c0_17] : memref<16x1xf32, #tpu.memory_space<vmem>>, vector<16x1xf32>
    %cst_18 = arith.constant 0.000000e+00 : f32
    %32 = vector.broadcast %cst_18 : f32 to vector<16x128xf32>
    %33 = arith.select %30, %5, %32 : vector<16x128xi1>, vector<16x128xf32>
    %cst_19 = arith.constant dense<0.000000e+00> : vector<16xf32>
    %34 = vector.multi_reduction <add>, %33, %cst_19 [1] : vector<16x128xf32> to vector<16xf32>
    %35 = vector.shape_cast %34 : vector<16xf32> to vector<16x1xf32>
    %36 = arith.addf %31, %35 : vector<16x1xf32>
    %c0_20 = arith.constant 0 : index
    %c0_21 = arith.constant 0 : index
    %37 = vector.load %arg11[%c0_20, %c0_21] : memref<16x1xf32, #tpu.memory_space<vmem>>, vector<16x1xf32>
    tpu.vector_store %arg11[%c0_20, %c0_21], %36 {strides = array<i32>} : memref<16x1xf32, #tpu.memory_space<vmem>>, vector<16x1xf32>,
    %c1_i32 = arith.constant 1 : i32
    %38 = arith.cmpi eq, %arg2, %c1_i32 : i32
    %39 = arith.extui %38 : i1 to i32
    %c0_i32_22 = arith.constant 0 : i32
    %40 = arith.cmpi ne, %39, %c0_i32_22 : i32
    scf.if %40 {
      %c0_23 = arith.constant 0 : index
      %c0_24 = arith.constant 0 : index
      %41 = vector.load %arg9[%c0_23, %c0_24] : memref<16x1xf32, #tpu.memory_space<vmem>>, vector<16x1xf32>
      %c0_25 = arith.constant 0 : index
      %c0_26 = arith.constant 0 : index
      %42 = vector.load %arg10[%c0_25, %c0_26] : memref<16x1xf32, #tpu.memory_space<vmem>>, vector<16x1xf32>
      %43 = math.log %42 : vector<16x1xf32>
      %44 = arith.addf %41, %43 : vector<16x1xf32>
      %c0_27 = arith.constant 0 : index
      %c0_28 = arith.constant 0 : index
      %c0_29 = arith.constant 0 : index
      %45 = vector.load %arg6[%c0_27, %c0_28, %c0_29] : memref<1x16x1xf32, #tpu.memory_space<vmem>>, vector<1x16x1xf32>
      %46 = vector.shape_cast %45 : vector<1x16x1xf32> to vector<16x1xf32>
      %47 = vector.shape_cast %44 : vector<16x1xf32> to vector<1x16x1xf32>
      tpu.vector_store %arg6[%c0_27, %c0_28, %c0_29], %47 {strides = array<i32>} : memref<1x16x1xf32, #tpu.memory_space<vmem>>, vector<1x16x1xf32>,
      %c0_30 = arith.constant 0 : index
      %c0_31 = arith.constant 0 : index
      %48 = vector.load %arg11[%c0_30, %c0_31] : memref<16x1xf32, #tpu.memory_space<vmem>>, vector<16x1xf32>
      %c0_32 = arith.constant 0 : index
      %c0_33 = arith.constant 0 : index
      %c0_34 = arith.constant 0 : index
      %49 = vector.load %arg7[%c0_32, %c0_33, %c0_34] : memref<1x16x1xf32, #tpu.memory_space<vmem>>, vector<1x16x1xf32>
      %50 = vector.shape_cast %49 : vector<1x16x1xf32> to vector<16x1xf32>
      %51 = vector.shape_cast %48 : vector<16x1xf32> to vector<1x16x1xf32>
      tpu.vector_store %arg7[%c0_32, %c0_33, %c0_34], %51 {strides = array<i32>} : memref<1x16x1xf32, #tpu.memory_space<vmem>>, vector<1x16x1xf32>,
    } else {
    }
    return
  }
  func.func @transform_0(%arg0: i32, %arg1: i32, %arg2: i32) -> (i32, i32) {
    %c0_i32 = arith.constant 0 : i32
    %c0_i32_0 = arith.constant 0 : i32
    return %arg1, %c0_i32 : i32, i32
  }
  func.func @transform_1(%arg0: i32, %arg1: i32, %arg2: i32) -> (i32, i32) {
    %c2_i32 = arith.constant 2 : i32
    %0 = arith.muli %arg0, %c2_i32 : i32
    %1 = arith.addi %0, %arg2 : i32
    %c0_i32 = arith.constant 0 : i32
    %c0_i32_0 = arith.constant 0 : i32
    return %1, %c0_i32 : i32, i32
  }
  func.func @transform_2(%arg0: i32, %arg1: i32, %arg2: i32) -> (i32, i32) {
    %c0_i32 = arith.constant 0 : i32
    %c0_i32_0 = arith.constant 0 : i32
    return %arg1, %c0_i32 : i32, i32
  }
  func.func @transform_3(%arg0: i32, %arg1: i32, %arg2: i32) -> (i32, i32, i32) {
    %c0_i32 = arith.constant 0 : i32
    %c0_i32_0 = arith.constant 0 : i32
    return %arg0, %arg1, %c0_i32 : i32, i32, i32
  }
  func.func @transform_4(%arg0: i32, %arg1: i32, %arg2: i32) -> (i32, i32, i32) {
    %c0_i32 = arith.constant 0 : i32
    %c0_i32_0 = arith.constant 0 : i32
    return %arg0, %arg1, %c0_i32 : i32, i32, i32
  }
}

</mosaic_0001>

<bundles_post_ra>
// kernel: tpu_custom_call.1
= control target key start
LH: loop header
LB: loop body
LE: loop exit
PB: predicated region body
PF: predicated region fallthrough
CT: control target
= control target key end

     0   :  { %10 = vsyncpa [#allocation7], 0  ;;  %s1244_s0 = inlined_call_operand.vmem [shape: bf16[16,128], index: 0, kind: input, shape index: {}]   ;;  %s1245_s1 = inlined_call_operand.hbm [shape: bf16[512,128], index: 1, kind: input, shape index: {}]   ;;  %s1246_s2 = inlined_call_operand.vmem [shape: s32[16,1], index: 2, kind: input, shape index: {}]   ;;  %s1247_s3 = inlined_call_operand.vmem [shape: f32[2,16,1], index: 3, kind: output, shape index: {0}]   ;;  %s1248_s4 = inlined_call_operand.vmem [shape: f32[2,16,1], index: 4, kind: output, shape index: {1}]  }
   0x1   :  { %12 = vsyncpa [#allocation7 + $0x1], 0  ;;  %s1083_s15 = smov 0   ;;  %s1085_s16 = smov 0  }
   0x2   :  { %s1087_s17 = smov 0   ;;  %s1089_s18 = smov 0  }
   0x3   :  { %s1091_s19 = smov 0   ;;  %s1093_s20 = smov 0  }
   0x4   :  { %s1095_s21 = smov 0   ;;  %s1097_s22 = smov 0  }
   0x5 LB: > { %s767_s23 = sadd.s32 4294967295, %s1048_s22   ;;  %s30_s24 = sadd.s32 1, %s1040_s20  ;;  %s1048_s22 = sphi %s1097_s22, %s18_s22   ;;  %s1044_s21 = sphi %s1095_s21, %s1258_s21   ;;  %s1040_s20 = sphi %s1093_s20, %s1257_s20   ;;  %s1036_s19 = sphi %s1091_s19, %s1256_s19   ;;  %s1032_s18 = sphi %s1089_s18, %s1255_s18   ;;  %s1028_s17 = sphi %s1087_s17, %s1254_s17   ;;  %s1024_s16 = sphi %s1085_s16, %s1253_s16   ;;  %s1020_s15 = sphi %s1083_s15, %s1252_s15  }
   0x6   : > { %p31_p0 = scmp.ge.s32.totalorder %s30_s24, 2  ;;  %s37_s25 = sadd.s32 1, %s1044_s21 }
   0x7   : > { %s769_s26 = sshll.u32 %s1044_s21, 1  ;;  %s74_s27 = sadd.s32 1, %s1028_s17 }
   0x8   : > { %s1260_s24 = smov (%p31_p0, %s30_s24), 0  ;;  %s1262_s25 = smov (!%p31_p0, %s37_s25), %s1044_s21 }
   0x9   : > { %s68_s28 = sadd.s32 %s1040_s20, %s769_s26  ;;  %p81_p1 = scmp.ne.s32.totalorder %s1028_s17, %s1024_s16 }
   0xa   : > { %p39_p2 = scmp.ge.s32.totalorder %s1262_s25, 2  ;;  %p82_p3 = scmp.eq.s32.totalorder %s1048_s22, 0 }
   0xb   : > { %p87_p4 = scmp.ne.s32.totalorder %s1024_s16, %s1020_s15  ;;  %p88_p5 = scmp.eq.s32.totalorder %s767_s23, 0 }
   0xc   : > { %s1264_s25 = smov (%p39_p2, %s1262_s25), 0  ;;  %p1136_p6 = por %p82_p3, %p81_p1 }
   0xd   : > { %p1140_p7 = por %p88_p5, %p87_p4  ;;  %s770_s5 = sshll.u32 %s1264_s25, 1 }
   0xe   : > { %s70_s6 = sadd.s32 %s770_s5, %s1260_s24  ;;  %p851_p8 = scmp.lt.s32.totalorder %s1048_s22, 4 }
   0xf   : > { %s71_s7 = ssub.s32 %s68_s28, %s70_s6  ;;  %s211_s8 = sand.u32 1, %s1028_s17  }
  0x10   : > { %p72_p9 = scmp.eq.s32.totalorder %s71_s7, 0  ;;  %s775_s9 = sshll.u32 %s211_s8, 6 }
  0x11   : > { %s802_s10 = sshll.u32 %s68_s28, 10  ;;  %s215_s15 = scalar_lea.vmem [#allocation6], %s775_s9 }
  0x12   : > { %s1149_s11 = scalar_select %p72_p9, %s1028_s17, %s74_s27  }
  0x13   : > { %s223_s14 = scalar_lea.hbm %s1245_s1, %s802_s10  ;;  %s224_s23 = sshll.u32 %s215_s15, 4  ;;  %s225_s23 = int_to_ptr.vmem [resolvable:$true] %s224_s23 }
  0x14   : > { %p1156_p10 = pnand %p851_p8, %p1136_p6  ;;  %s212_s5 = scalar_lea.sflag [#allocation7], %s211_s8 }
  0x15   : > { %s967_s6 = scalar_lea.vmem %s225_s23, 1024  ;;  %s1050_s27 = smov [#allocation6]  }
  0x16   : > { %p956_p11 = pneg %p1156_p10  ;;  %p968_p12 = scmp.ne.s32.totalorder %s225_s23, %s967_s6 }
  0x17   : > { %s972_s28 = sshll.u32 %s1050_s27, 4  ;;  %s973_s28 = int_to_ptr.vmem [resolvable:$false] %s972_s28 }
  0x18   : > { %p970_p13 = pnand %p968_p12, %p956_p11  ;;  %s974_s7 = scalar_lea.vmem %s973_s28, 2048 }
  0x19   : > { %p975_p1 = scmp.lt.s32.totalorder %s225_s23, %s973_s28  ;;  %p976_p2 = scmp.lt.s32.totalorder %s974_s7, %s967_s6 }
  0x1a   : > { %p971_p0 = pneg %p970_p13 }
  0x1b   : > { %p977_p3 = por %p976_p2, %p975_p1 }
  0x1d   : > { %p978_p4 = pnand %p977_p3, %p971_p0 }
  0x1f   : > { %981 = shalt.err (!%p978_p4)
}
  0x20   : > { %s1051_s29 = smov 64   ;;  %s1052_s8 = smov 4  }
  0x21   : > { %850 = dma.hbm_to_vmem [thread:$0]  (!%p1156_p10), %s223_s14, 1024, %s225_s23, %s212_s5, %s1051_s29, %s1051_s29, %s1052_s8  }
  0x22   : > { %p779_p5 = scmp.ge.s32.totalorder %s1048_s22, 1  ;;  %p232_p6 = scmp.lt.s32.totalorder %s1048_s22, 5 }
  0x24   : > { %p233_p8 = pnand %p779_p5, %p232_p6 }
  0x25   : > { %s238_s9 = sand.u32 (!%p233_p8), 1, %s1024_s16  }
  0x26   : > { %236 = sbr.rel (%p233_p8) target bundleno = 951 (0x3b7), region = 32  ;;  %s780_s10 = sshll.u32 (!%p233_p8), %s238_s9, 6 }
  0x27   : > { %s239_s12 = scalar_lea.sflag (!%p233_p8), [#allocation7], %s238_s9  ;;  %s1167_s13 = scalar_lea.vmem (!%p233_p8), [#allocation6], %s780_s10 }
  0x2b   : > { %1015 = dma.done.wait (%p1140_p7), %s239_s12, 1024  }
  0x2c   : > { %1017 = vsyncadd (%p1140_p7), %s239_s12, 4294966272  ;;  %p306_p9 = scmp.lt.s32.totalorder %s1036_s19, 1  ;;  %p785_p10 = scmp.ne.s32.totalorder %s1032_s18, 0 }
  0x2e   : > { %s307_s14 = scalar_select %p306_p9, %s1036_s19, 1 }
  0x2f   : > { %329 = sbr.rel (%p785_p10) target bundleno = 240 (0xf0), region = 40 }
  0x30   : > { %s803_s15 = sshll.u32 %s307_s14, 4 }
  0x31   : > { %s1178_s5 = scalar_lea.vmem %s1247_s3, %s803_s15  ;;  %s1183_s28 = scalar_lea.vmem %s1248_s4, %s803_s15 }
  0x34   : > { %v808_v0 = vld [vmem:[%s1244_s0] sm:$0xff]   ;;  %vm372_vm0 = vcmask 7168   ;;  %v1053_v5 = vmov -inf   ;;  %v1054_v6 = vmov 0.0  }
  0x35   : > { %v809_v1 = vunpack.c.l.bf16 %v808_v0  ;;  %v810_v2 = vunpack.c.h.bf16 %v808_v0  ;;  %373 = vst.msk [vmem:[#allocation3] sm:$0xff] %vm372_vm0, %v1053_v5  ;;  %374 = vst.msk [vmem:[#allocation3 + $0x8] sm:$0xff] %vm372_vm0, %v1053_v5 }
  0x36   : > { %375 = vst.msk [vmem:[#allocation4] sm:$0xff] %vm372_vm0, %v1054_v6  ;;  %376 = vst.msk [vmem:[#allocation4 + $0x8] sm:$0xff] %vm372_vm0, %v1054_v6 }
  0x37   : > { %v334_v3 = vmul.f32 %v809_v1, %v809_v1  ;;  %v335_v4 = vmul.f32 %v810_v2, %v810_v2  ;;  %377 = vst.msk [vmem:[#allocation5] sm:$0xff] %vm372_vm0, %v1054_v6  ;;  %378 = vst.msk [vmem:[#allocation5 + $0x8] sm:$0xff] %vm372_vm0, %v1054_v6 }
  0x39   : > { %336 = vadd.xlane.f32.xlu0 %v334_v3 }
  0x3d   : > { %338 = vadd.xlane.f32.xlu0 %v335_v4 }
  0xc2   : > { %v337_v7 = vpop.xlane.xlu0 %336 }
  0xc3   : > { %923 = vrsqrt.f32 %v337_v7  ;;  %vm342_vm1 = vcmp.eq.f32.partialorder %v337_v7, inf  ;;  %v345_v11 = vand.u32 2147483648, %v337_v7  ;;  %vm344_vm2 = vcmp.eq.f32.partialorder %v337_v7, 0.0 }
  0xc6   : > { %v339_v8 = vpop.xlane.xlu0 %338 }
  0xc7   : > { %925 = vrsqrt.f32 %v339_v8  ;;  %vm349_vm3 = vcmp.eq.f32.partialorder %v339_v8, inf  ;;  %v352_v17 = vand.u32 2147483648, %v339_v8  ;;  %vm351_vm4 = vcmp.eq.f32.partialorder %v339_v8, 0.0 }
  0xd0   : > { %v924_v9 = vpop.eup %923 }
  0xd1   : > { %v341_v10 = vmul.f32 %v924_v9, %v337_v7 }
  0xd3   : > { %v343_v12 = vsel %vm342_vm1, %v337_v7, %v341_v10 }
  0xd4   : > { %v926_v13 = vpop.eup %925  ;;  %v346_v14 = vsel %vm344_vm2, %v345_v11, %v343_v12 }
  0xd5   : > { %v354_v15 = vmax.f32 %v346_v14, 1e-12  ;;  %v348_v16 = vmul.f32 %v926_v13, %v339_v8 }
  0xd7   : > { %927 = vrcp.f32 %v354_v15  ;;  %v350_v18 = vsel %vm349_vm3, %v339_v8, %v348_v16 }
  0xd8   : > { %v353_v19 = vsel %vm351_vm4, %v352_v17, %v350_v18 }
  0xd9   : > { %v355_v20 = vmax.f32 %v353_v19, 1e-12 }
  0xdb   : > { %929 = vrcp.f32 %v355_v20 }
  0xe4   : > { %v928_v21 = vpop.eup %927 }
  0xe5   : > { %v358_v22 = vmul.f32 50.0, %v928_v21 }
  0xe7   : > { %v360_v25 = vmul.f32 %v809_v1, %v358_v22 }
  0xe8   : > { %v930_v23 = vpop.eup %929 }
  0xe9   : > { %v359_v24 = vmul.f32 50.0, %v930_v23 }
  0xeb   : > { %v361_v26 = vmul.f32 %v810_v2, %v359_v24 }
  0xed   : > { %v814_v27 = vpack.c.bf16 %v361_v26, %v360_v25 }
  0xef   : > { %815 = vst [vmem:[#allocation2] sm:$0xff] %v814_v27  }
  0xf0 PF: > { %v933_v28 = vld [vmem:[%s1167_s13 + $0x38] sm:$0xff]   ;;  %v1055_v29 = vmov 0.0   ;;  %vm1056_vm5 = vmmov 0   ;;  %v934_v30 = vld [vmem:[%s1167_s13 + $0x30] sm:$0xff]   ;;  %v935_v31 = vld [vmem:[%s1167_s13 + $0x28] sm:$0xff]   ;;  %v1057_v38 = vmov 0   ;;  %v537_v54 = vlaneseq }
  0xf1   : > { %825 = vmatprep.subr.bf16.mxu0 %v1055_v29  ;;  %841 = vmatprep.mubr.msk.bf16.mxu0 %vm1056_vm5, %v1055_v29  ;;  %v936_v32 = vld [vmem:[%s1167_s13 + $0x20] sm:$0xff]   ;;  %v937_v33 = vld [vmem:[%s1167_s13 + $0x18] sm:$0xff]   ;;  %v938_v34 = vld [vmem:[%s1167_s13 + $0x10] sm:$0xff]   ;;  %s797_s29 = sshll.u32 %s1036_s19, 1  ;;  %vm532_vm6 = vcmask 7168   ;;  %p799_p7 = scmp.ne.s32.totalorder %s1032_s18, 1 }
  0xf2   : > { %826 = vmatpush3.bf16.xpose.msra.mxu0 %v933_v28  ;;  %v939_v35 = vld [vmem:[%s1167_s13 + $0x8] sm:$0xff]   ;;  %v940_v36 = vld [vmem:[%s1167_s13] sm:$0xff]   ;;  %932 = vset.pattern.permute.xlu0 %v1057_v38  ;;  %s542_s8 = sadd.s32 %s1032_s18, %s797_s29  ;;  %v492_v46 = vld [vmem:[#allocation3] sm:$0xff]  ;;  %v538_v57 = vand.u32 127, %v537_v54 }
  0xf3   : > { %827 = vmatprep.subr.bf16.mxu0 %v1055_v29  ;;  %931 = vset.pattern.permute.xlu1 %v1057_v38  ;;  %s798_s9 = sshll.u32 %s542_s8, 7  ;;  %v539_v43 = vld [vmem:[%s1246_s2] sm:$0xff]  ;;  %v493_v49 = vld [vmem:[#allocation3 + $0x8] sm:$0xff]  ;;  %v540_v52 = vld [vmem:[%s1246_s2 + $0x8] sm:$0xff] }
  0xf4   : > { %v544_v44 = vstv %s798_s9  ;;  %v555_v5 = vld [vmem:[#allocation5] sm:$0xff]  ;;  %v506_v12 = vld [vmem:[#allocation4] sm:$0xff]  ;;  %v507_v16 = vld [vmem:[#allocation4 + $0x8] sm:$0xff] }
  0xf5   : > { %v545_v45 = vsub.s32 %v539_v43, %v544_v44  ;;  %v546_v56 = vsub.s32 %v540_v52, %v544_v44  ;;  %v556_v21 = vld [vmem:[#allocation5 + $0x8] sm:$0xff] }
  0xf6   : > { %v941_v37 = vld [vmem:[#allocation2] sm:$0xff]  }
  0xfa   : > { %828 = vmatpush3.bf16.xpose.msra.mxu0 %v934_v30 }
  0xfb   : > { %829 = vmatprep.subr.bf16.mxu0 %v1055_v29 }
 0x102   : > { %830 = vmatpush3.bf16.xpose.msra.mxu0 %v935_v31 }
 0x103   : > { %831 = vmatprep.subr.bf16.mxu0 %v1055_v29 }
 0x10a   : > { %832 = vmatpush3.bf16.xpose.msra.mxu0 %v936_v32 }
 0x10b   : > { %833 = vmatprep.subr.bf16.mxu0 %v1055_v29 }
 0x112   : > { %834 = vmatpush3.bf16.xpose.msra.mxu0 %v937_v33 }
 0x113   : > { %835 = vmatprep.subr.bf16.mxu0 %v1055_v29 }
 0x11a   : > { %836 = vmatpush3.bf16.xpose.msra.mxu0 %v938_v34 }
 0x11b   : > { %837 = vmatprep.subr.bf16.mxu0 %v1055_v29 }
 0x122   : > { %838 = vmatpush3.bf16.xpose.msra.mxu0 %v939_v35 }
 0x123   : > { %839 = vmatprep.subr.bf16.mxu0 %v1055_v29 }
 0x12a   : > { %840 = vmatpush3.bf16.xpose.msra.mxu0 %v940_v36 }
 0x131   : > { %842 = vmatmul.mubr.bf16.vlgmr.msra.gmra.mxu0 %v941_v37 }
 0x1f1   : > { %v485_v39 = vpop.f32.mrf.mxu0 }
 0x1f2   : > { %494 = vmax.xlane.f32.xlu0 %v485_v39 }
 0x1f3   : > { %v843_v40 = vpop.f32.mrf.mxu0 }
 0x1f5   : > { %v488_v41 = vpop.f32.mrf.mxu0 }
 0x1f6   : > { %496 = vmax.xlane.f32.xlu0 %v488_v41 }
 0x1f7   : > { %v844_v42 = vpop.f32.mrf.mxu0 }
 0x20c   : > { %548 = vperm.xlu0 %932, %v545_v45  }
 0x27b   : > { %v495_v47 = vpop.xlane.xlu0 %494 }
 0x27c   : > { %v498_v48 = vmax.f32 %v492_v46, %v495_v47 }
 0x27e   : > { %v500_v50 = vsub.f32 %v492_v46, %v498_v48  ;;  %535 = vst.msk [vmem:[#allocation3] sm:$0xff] %vm532_vm6, %v498_v48  ;;  %512 = vperm.xlu1 %931, %v498_v48  }
 0x27f   : > { %v497_v51 = vpop.xlane.xlu0 %496 }
 0x280   : > { %v499_v53 = vmax.f32 %v493_v49, %v497_v51  ;;  %v502_v9 = vmul.f32 1.442695, %v500_v50 }
 0x282   : > { %v501_v55 = vsub.f32 %v493_v49, %v499_v53  ;;  %536 = vst.msk [vmem:[#allocation3 + $0x8] sm:$0xff] %vm532_vm6, %v499_v53  ;;  %517 = vperm.xlu1 %931, %v499_v53  }
 0x284   : > { %v504_v10 = vmul.f32 1.442695, %v501_v55 }
 0x286   : > { %551 = vperm.xlu1 %931, %v546_v56  }
 0x287   : > { %v549_v58 = vpop.permute.xlu0 %548 }
 0x288   : > { %vm553_vm7 = vcmp.eq.s32.totalorder %v538_v57, %v549_v58 }
 0x289   : > { %v557_v59 = vsel %vm553_vm7, %v485_v39, 0.0 }
 0x28a   : > { %559 = vadd.xlane.f32.xlu0 %v557_v59 }
 0x2f9   : > { %v513_v60 = vpop.permute.xlu1 %512 }
 0x2fa   : > { %v520_v61 = vsub.f32 %v485_v39, %v513_v60 }
 0x2fc   : > { %v522_v62 = vmul.f32 1.442695, %v520_v61 }
 0x2fd   : > { %v518_v63 = vpop.permute.xlu1 %517 }
 0x2fe   : > { %942 = vpow2.f32 %v522_v62  ;;  %v521_v0 = vsub.f32 %v488_v41, %v518_v63 }
 0x300   : > { %v524_v1 = vmul.f32 1.442695, %v521_v0 }
 0x301   : > { %v552_v3 = vpop.permute.xlu1 %551 }
 0x302   : > { %944 = vpow2.f32 %v524_v1  ;;  %vm554_vm8 = vcmp.eq.s32.totalorder %v538_v57, %v552_v3 }
 0x303   : > { %v558_v7 = vsel %vm554_vm8, %v488_v41, 0.0  ;;  %946 = vpow2.f32 %v502_v9 }
 0x304   : > { %948 = vpow2.f32 %v504_v10 }
 0x30b   : > { %v943_v2 = vpop.eup %942 }
 0x30c   : > { %526 = vadd.xlane.f32.xlu1 %v943_v2 }
 0x30f   : > { %v945_v4 = vpop.eup %944 }
 0x310   : > { %528 = vadd.xlane.f32.xlu1 %v945_v4  ;;  %v947_v11 = vpop.eup %946 }
 0x311   : > { %v508_v13 = vmul.f32 %v947_v11, %v506_v12  ;;  %v949_v14 = vpop.eup %948 }
 0x312   : > { %v509_v18 = vmul.f32 %v949_v14, %v507_v16 }
 0x313   : > { %v560_v6 = vpop.xlane.xlu0 %559 }
 0x314   : > { %v563_v8 = vadd.f32 %v560_v6, %v555_v5  ;;  %561 = vadd.xlane.f32.xlu1 %v558_v7 }
 0x316   : > { %565 = vst.msk [vmem:[#allocation5] sm:$0xff] %vm532_vm6, %v563_v8 }
 0x395   : > { %v527_v15 = vpop.xlane.xlu1 %526 }
 0x396   : > { %v530_v17 = vadd.f32 %v527_v15, %v508_v13 }
 0x398   : > { %533 = vst.msk [vmem:[#allocation4] sm:$0xff] %vm532_vm6, %v530_v17 }
 0x399   : > { %v529_v19 = vpop.xlane.xlu1 %528 }
 0x39a   : > { %v531_v20 = vadd.f32 %v529_v19, %v509_v18 }
 0x39c   : > { %534 = vst.msk [vmem:[#allocation4 + $0x8] sm:$0xff] %vm532_vm6, %v531_v20  ;;  %570 = sbr.rel (%p799_p7) target bundleno = 951 (0x3b7), region = 44 }
 0x39d   : > { %v562_v22 = vpop.xlane.xlu1 %561 }
 0x39e   : > { %v564_v23 = vadd.f32 %v562_v22, %v556_v21 }
 0x3a0   : > { %566 = vst.msk [vmem:[#allocation5 + $0x8] sm:$0xff] %vm532_vm6, %v564_v23 }
 0x3a1   : > { %v573_v24 = vld [vmem:[#allocation4] sm:$0xff]  ;;  %v583_v26 = vld [vmem:[#allocation5] sm:$0xff]  ;;  %v572_v32 = vld [vmem:[#allocation3 + $0x8] sm:$0xff] }
 0x3a2   : > { %950 = vlog2.f32 %v573_v24  ;;  %585 = vst.msk [vmem:[%s1183_s28] sm:$0xff] %vm532_vm6, %v583_v26  ;;  %v571_v29 = vld [vmem:[#allocation3] sm:$0xff] }
 0x3a3   : > { %v574_v25 = vld [vmem:[#allocation4 + $0x8] sm:$0xff] }
 0x3a4   : > { %952 = vlog2.f32 %v574_v25 }
 0x3a7   : > { %v584_v27 = vld [vmem:[#allocation5 + $0x8] sm:$0xff] }
 0x3a8   : > { %586 = vst.msk [vmem:[%s1183_s28 + $0x8] sm:$0xff] %vm532_vm6, %v584_v27 }
 0x3af   : > { %v951_v28 = vpop.eup %950 }
 0x3b0   : > { %v576_v31 = vmul.f32 0.6931472, %v951_v28 }
 0x3b1   : > { %v953_v30 = vpop.eup %952 }
 0x3b2   : > { %v578_v33 = vmul.f32 0.6931472, %v953_v30  ;;  %v579_v34 = vadd.f32 %v576_v31, %v571_v29 }
 0x3b4   : > { %v580_v35 = vadd.f32 %v578_v33, %v572_v32  ;;  %581 = vst.msk [vmem:[%s1178_s5] sm:$0xff] %vm532_vm6, %v579_v34 }
 0x3b6   : > { %582 = vst.msk [vmem:[%s1178_s5 + $0x8] sm:$0xff] %vm532_vm6, %v580_v35 }
 0x3b7 PF: > { %s18_s22 = sadd.s32 1, %s1048_s22   ;;  %s1252_s15 = smov %s1024_s16 }
 0x3b8   : > { %p15_p11 = scmp.ge.s32.totalorder %s18_s22, 6   ;;  %s1253_s16 = smov %s1028_s17 }
 0x3b9   : > { %s1254_s17 = smov %s1149_s11  ;;  %s1255_s18 = smov %s1040_s20 }
 0x3ba   : > { %s1256_s19 = smov %s1044_s21  ;;  %s1257_s20 = smov %s1260_s24 }
 0x3bb   : > { %s1258_s21 = smov %s1264_s25  ;;  %17 = sbr.rel (!%p15_p11) target bundleno = 5 (0x5), region = 98 }
 0x3c0   :  { %642 = vsyncpa [#allocation7], 1 }
 0x3c1   :  { %644 = vsyncpa [#allocation7 + $0x1], 1 }

</bundles_post_ra>
